<compile_context>
chip_gen: v7x
topology: tpu7x:2x2x1
jax: 0.10.0
libtpu: 0.0.40
codegen_flags: <defaults>
</compile_context>

<pallas_src>
import math

import jax
import jax.numpy as jnp
from jax.experimental import pallas as pl
from jax.experimental.pallas import tpu as pltpu

D_K = 64  # fixed by the PyTorch module (self.d_k = 64); 1/sqrt(64) = 0.125 is exact in bf16


def _sdpa_kernel(q_ref, k_ref, v_ref, mask_ref, ctx_ref, attn_ref):
    # Block shapes: q (bblk, Tq, dk)  k (bblk, Lk, dk)  v (bblk, Lk, dv)
    #               mask/attn (bblk, Tq, Lk)            ctx (bblk, Tq, dv)
    q = q_ref[...]          # bf16, already scaled by 1/sqrt(d_k) in the wrapper
    k = k_ref[...]          # bf16
    v = v_ref[...]          # bf16
    mask = mask_ref[...]    # bool, True = masked out

    # scores = (Q / sqrt(d_k)) @ K^T, contraction over d_k (no materialized
    # K transpose); bf16 operands, f32 accumulation on the MXU.
    scores = jnp.einsum("bqd,bkd->bqk", q, k, preferred_element_type=jnp.float32)

    # masked_fill_(attn_mask, -1e9)
    scores = jnp.where(mask, jnp.float32(-1000000000.0), scores)

    # Numerically-stable softmax over the key axis (f32), matching
    # torch.nn.Softmax(dim=-1).  Exact per-row reciprocal (tiny [b,Tq,1]
    # tensor) so the returned attention rows sum to 1.
    m = jnp.max(scores, axis=-1, keepdims=True)
    e = jnp.exp(scores - m)
    denom = jnp.sum(e, axis=-1, keepdims=True)
    attn = e * (1.0 / denom)

    # context = attn @ V  (bf16 operands, f32 accumulation)
    ctx = jnp.einsum("bqk,bkd->bqd", attn.astype(v.dtype), v,
                     preferred_element_type=jnp.float32)

    # TODO(synk): dv=64 < 128 lanes -> masked partial stores; a lane-dense
    # packing of the ctx output (128-wide last dim) would halve store bundles.
    ctx_ref[...] = ctx.astype(ctx_ref.dtype)
    attn_ref[...] = attn.astype(attn_ref.dtype)


def _vmem_capacity_bytes():
    """Per-core VMEM capacity; conservative fallback = v7x (64 MiB)."""
    try:
        return int(pltpu.get_tpu_info().vmem_capacity_bytes)
    except Exception:
        return 64 * 1024 * 1024


def _choose_tiles(BH, Lq, Lk, dk, dv, ctx_bytes, attn_bytes, vmem_budget,
                  max_bblk=16, max_tq=512, min_total_steps=8):
    """Pick (bblk, Tq) = (# batch*head slices, # len_q rows) per grid step.

    Largest per-step block that (a) fits the VMEM budget with double-buffered
    pipelining and (b) still leaves >= min_total_steps grid steps so DMA can
    overlap compute and v7x's two TensorCores both get work.
    """
    # Tq candidates: prefer multiples of 16 (bf16-friendly sublane tiling).
    if Lq % 16 == 0:
        tq_cands = [t for t in range(16, min(Lq, max_tq) + 1, 16) if Lq % t == 0]
    elif Lq % 8 == 0:
        tq_cands = [t for t in range(8, min(Lq, max_tq) + 1, 8) if Lq % t == 0]
    else:
        tq_cands = []
    if not tq_cands:
        tq_cands = [Lq]
    bblk_cands = [b for b in range(1, min(BH, max_bblk) + 1) if BH % b == 0]

    def step_bytes(bblk, tq):
        pipelined = (bblk * tq * dk * 2          # Q block    (bf16)
                     + bblk * Lk * dk * 2        # K block    (bf16)
                     + bblk * Lk * dv * 2        # V block    (bf16)
                     + bblk * tq * Lk * 1        # mask block (bool)
                     + bblk * tq * dv * ctx_bytes
                     + bblk * tq * Lk * attn_bytes)
        # f32 scores/exp/attn temporaries + f32 ctx accumulator in the body.
        temporaries = 3 * bblk * tq * Lk * 4 + bblk * tq * dv * 4
        return 2 * pipelined + temporaries       # BlockSpec double-buffers blocks

    feasible, fallback = [], []
    for bblk in bblk_cands:
        for tq in tq_cands:
            b = step_bytes(bblk, tq)
            steps = (BH // bblk) * (Lq // tq)
            (feasible if b <= vmem_budget else fallback).append((bblk, tq, b, steps))
    if feasible:
        bblk, tq, b, _ = max(
            feasible, key=lambda c: (c[3] >= min_total_steps, c[0] * c[1], -c[2]))
    else:  # nothing fits the budget -> smallest block, best effort
        bblk, tq, b, _ = min(fallback, key=lambda c: c[2])
    return bblk, tq, b


def scaled_dot_product_attention(Q, K, V, attn_mask, *, attn_dtype=jnp.bfloat16):
    """Q: [B,H,Lq,d_k]  K: [B,H,Lk,d_k]  V: [B,H,Lk,d_v]  attn_mask: [B,H,Lq,Lk] bool.

    Returns (context [B,H,Lq,d_v], attn [B,H,Lq,Lk]) like the PyTorch module.
    attn_dtype defaults to bf16 (halves the dominant HBM writeback stream);
    pass jnp.float32 to keep the original f32 attention contract.
    """
    B, H, Lq, dk = Q.shape
    Lk = K.shape[2]
    dv = V.shape[3]
    BH = B * H
    out_dtype = Q.dtype

    # Fold 1/sqrt(d_k) = 0.125 (exact power of two) into the f32->bf16 cast of Q
    # so there is no in-kernel scalar multiply (v5e has no bf16 VALU).
    scale = 1.0 / math.sqrt(D_K)
    q = (Q.reshape(BH, Lq, dk) * scale).astype(jnp.bfloat16)
    k = K.reshape(BH, Lk, dk).astype(jnp.bfloat16)
    v = V.reshape(BH, Lk, dv).astype(jnp.bfloat16)
    # TODO(synk): if the mask is known to be shared across heads (padding mask),
    # keep it [B, Lq, Lk] and index it by batch to cut mask HBM reads by H×.
    msk = attn_mask.reshape(BH, Lq, Lk).astype(jnp.bool_)

    ctx_bytes = jnp.dtype(out_dtype).itemsize
    attn_bytes = jnp.dtype(attn_dtype).itemsize

    capacity = _vmem_capacity_bytes()
    vmem_budget = max(24 << 20, min(capacity - (16 << 20), 100 << 20))
    bblk, tq, step_bytes = _choose_tiles(
        BH, Lq, Lk, dk, dv, ctx_bytes, attn_bytes, vmem_budget)
    vmem_limit = int(max(32 << 20, min(step_bytes + (16 << 20), capacity - (4 << 20))))

    # len_q tiles on the innermost grid axis -> K/V block index is unchanged
    # across it, so K/V are not re-fetched per Tq step.
    grid = (BH // bblk, Lq // tq)

    flops = 2 * BH * Lq * Lk * dk + 2 * BH * Lq * Lk * dv
    bytes_accessed = (q.size * 2 + k.size * 2 + v.size * 2 + msk.size
                      + BH * Lq * dv * ctx_bytes + BH * Lq * Lk * attn_bytes)
    cost = pl.CostEstimate(flops=flops, transcendentals=BH * Lq * Lk,
                           bytes_accessed=bytes_accessed)

    # TODO(synk): for Lq/Lk >= ~1024 (esp. v7x's 64 MiB VMEM), switch to a
    # flash-style online-softmax loop over Lk tiles when the caller does not
    # need the full attention matrix; the module contract returns it, so the
    # full (Tq, Lk) tile is materialized here.
    ctx, attn = pl.pallas_call(
        _sdpa_kernel,
        out_shape=(
            jax.ShapeDtypeStruct((BH, Lq, dv), out_dtype),
            jax.ShapeDtypeStruct((BH, Lq, Lk), attn_dtype),
        ),
        grid_spec=pltpu.PrefetchScalarGridSpec(
            num_scalar_prefetch=0,
            grid=grid,
            in_specs=[
                pl.BlockSpec((bblk, tq, dk), lambda i, j: (i, j, 0)),
                pl.BlockSpec((bblk, Lk, dk), lambda i, j: (i, 0, 0)),
                pl.BlockSpec((bblk, Lk, dv), lambda i, j: (i, 0, 0)),
                pl.BlockSpec((bblk, tq, Lk), lambda i, j: (i, j, 0)),
            ],
            out_specs=[
                pl.BlockSpec((bblk, tq, dv), lambda i, j: (i, j, 0)),
                pl.BlockSpec((bblk, tq, Lk), lambda i, j: (i, j, 0)),
            ],
        ),
        compiler_params=pltpu.CompilerParams(
            dimension_semantics=("parallel", "parallel"),
            vmem_limit_bytes=vmem_limit,
        ),
        cost_estimate=cost,
    )(q, k, v, msk)

    return ctx.reshape(B, H, Lq, dv), attn.reshape(B, H, Lq, Lk)


def _reference(Q, K, V, attn_mask):
    scores = jnp.einsum("bhqd,bhkd->bhqk", Q, K) / math.sqrt(D_K)
    scores = jnp.where(attn_mask, -1000000000.0, scores)
    attn = jax.nn.softmax(scores, axis=-1)
    ctx = jnp.einsum("bhqk,bhkd->bhqd", attn, V)
    return ctx, attn


if __name__ == "__main__":
    key = jax.random.PRNGKey(0)
    kq, kk, kv, km = jax.random.split(key, 4)

    B, H, Lq, Lk, dv = 2, 2, 8, 8, 64
    Q = jax.random.normal(kq, (B, H, Lq, D_K), dtype=jnp.float32)
    K = jax.random.normal(kk, (B, H, Lk, D_K), dtype=jnp.float32)
    V = jax.random.normal(kv, (B, H, Lk, dv), dtype=jnp.float32)
    # boolean mask, True = position masked out (as in masked_fill_)
    attn_mask = jax.random.bernoulli(km, p=0.25, shape=(B, H, Lq, Lk))

    ctx, attn = scaled_dot_product_attention(Q, K, V, attn_mask)
    jax.block_until_ready((ctx, attn))

    ctx_ref, attn_ref = _reference(Q, K, V, attn_mask)
    # Tolerances account for bf16 matmul operands and the bf16 attention
    # output (f32 reference); accumulation and softmax math remain f32.
    assert jnp.allclose(ctx, ctx_ref, atol=3e-2, rtol=3e-2), "context mismatch"
    assert jnp.allclose(attn.astype(jnp.float32), attn_ref,
                        atol=2e-2, rtol=2e-2), "attn mismatch"

    print("KERNEL_OK")
</pallas_src>

<mosaic_0001>
module attributes {stable_mosaic.version = 11 : i64} {
  func.func @_sdpa_kernel(%arg0: i32, %arg1: i32, %arg2: memref<4x8x64xbf16, #tpu.memory_space<vmem>>, %arg3: memref<4x8x64xbf16, #tpu.memory_space<vmem>>, %arg4: memref<4x8x64xbf16, #tpu.memory_space<vmem>>, %arg5: memref<4x8x8xi32, #tpu.memory_space<vmem>>, %arg6: memref<4x8x64xf32, #tpu.memory_space<vmem>>, %arg7: memref<4x8x8xbf16, #tpu.memory_space<vmem>>) attributes {dimension_semantics = [#tpu.dimension_semantics<parallel>, #tpu.dimension_semantics<parallel>], iteration_bounds = array<i64: 1, 1>, scalar_prefetch = 0 : i64, scratch_operands = 0 : i64, tpu.core_type = #tpu.core_type<tc>, window_params = [{transform_indices = @transform_0, window_bounds = array<i64: 4, 8, 64>}, {transform_indices = @transform_1, window_bounds = array<i64: 4, 8, 64>}, {transform_indices = @transform_2, window_bounds = array<i64: 4, 8, 64>}, {transform_indices = @transform_3, window_bounds = array<i64: 4, 8, 8>}, {transform_indices = @transform_4, window_bounds = array<i64: 4, 8, 64>}, {transform_indices = @transform_5, window_bounds = array<i64: 4, 8, 8>}]} {
    %c0 = arith.constant 0 : index
    %c0_0 = arith.constant 0 : index
    %c0_1 = arith.constant 0 : index
    %0 = vector.load %arg2[%c0, %c0_0, %c0_1] : memref<4x8x64xbf16, #tpu.memory_space<vmem>>, vector<4x8x64xbf16>
    %c0_2 = arith.constant 0 : index
    %c0_3 = arith.constant 0 : index
    %c0_4 = arith.constant 0 : index
    %1 = vector.load %arg3[%c0_2, %c0_3, %c0_4] : memref<4x8x64xbf16, #tpu.memory_space<vmem>>, vector<4x8x64xbf16>
    %c0_5 = arith.constant 0 : index
    %c0_6 = arith.constant 0 : index
    %c0_7 = arith.constant 0 : index
    %2 = vector.load %arg4[%c0_5, %c0_6, %c0_7] : memref<4x8x64xbf16, #tpu.memory_space<vmem>>, vector<4x8x64xbf16>
    %c0_8 = arith.constant 0 : index
    %c0_9 = arith.constant 0 : index
    %c0_10 = arith.constant 0 : index
    %3 = vector.load %arg5[%c0_8, %c0_9, %c0_10] : memref<4x8x8xi32, #tpu.memory_space<vmem>>, vector<4x8x8xi32>
    %cst = arith.constant dense<0> : vector<4x8x8xi32>
    %4 = arith.cmpi ne, %3, %cst : vector<4x8x8xi32>
    "tpu.trace_start"() <{level = 10 : i32, message = "bqd,bkd->bqk"}> : () -> ()
    %cst_11 = arith.constant dense<0.000000e+00> : vector<4x8x8xf32>
    %5 = tpu.matmul %0, %1, %cst_11 {dimension_numbers = #tpu.dot_dimension_numbers<[2], [2], [1], [1], [0, 0, 0, 1, 1, 1], [0], [0]>} : vector<4x8x64xbf16>, vector<4x8x64xbf16>, vector<4x8x8xf32> -> vector<4x8x8xf32>
    %cst_12 = arith.constant -1.000000e+09 : f32
    "tpu.trace_stop"() : () -> ()
    %6 = vector.broadcast %cst_12 : f32 to vector<4x8x8xf32>
    %7 = arith.select %4, %6, %5 : vector<4x8x8xi1>, vector<4x8x8xf32>
    %cst_13 = arith.constant dense<0xFF800000> : vector<4x8xf32>
    %8 = vector.multi_reduction <maximumf>, %7, %cst_13 [2] : vector<4x8x8xf32> to vector<4x8xf32>
    %9 = vector.shape_cast %8 : vector<4x8xf32> to vector<4x8x1xf32>
    %10 = vector.broadcast %9 : vector<4x8x1xf32> to vector<4x8x8xf32>
    %11 = arith.subf %7, %10 : vector<4x8x8xf32>
    %12 = math.exp %11 : vector<4x8x8xf32>
    %cst_14 = arith.constant dense<0.000000e+00> : vector<4x8xf32>
    %13 = vector.multi_reduction <add>, %12, %cst_14 [2] : vector<4x8x8xf32> to vector<4x8xf32>
    %14 = vector.shape_cast %13 : vector<4x8xf32> to vector<4x8x1xf32>
    %cst_15 = arith.constant 1.000000e+00 : f32
    %15 = vector.broadcast %cst_15 : f32 to vector<4x8x1xf32>
    %16 = arith.divf %15, %14 : vector<4x8x1xf32>
    %17 = vector.broadcast %16 : vector<4x8x1xf32> to vector<4x8x8xf32>
    %18 = arith.mulf %12, %17 : vector<4x8x8xf32>
    %19 = arith.truncf %18 : vector<4x8x8xf32> to vector<4x8x8xbf16>
    "tpu.trace_start"() <{level = 10 : i32, message = "bqk,bkd->bqd"}> : () -> ()
    %cst_16 = arith.constant dense<0.000000e+00> : vector<4x8x64xf32>
    %20 = tpu.matmul %19, %2, %cst_16 {dimension_numbers = #tpu.dot_dimension_numbers<[2], [1], [1], [2], [0, 0, 0, 1, 1, 2], [0], [0]>} : vector<4x8x8xbf16>, vector<4x8x64xbf16>, vector<4x8x64xf32> -> vector<4x8x64xf32>
    "tpu.trace_stop"() : () -> ()
    %c0_17 = arith.constant 0 : index
    %c0_18 = arith.constant 0 : index
    %c0_19 = arith.constant 0 : index
    %21 = vector.load %arg6[%c0_17, %c0_18, %c0_19] : memref<4x8x64xf32, #tpu.memory_space<vmem>>, vector<4x8x64xf32>
    tpu.vector_store %arg6[%c0_17, %c0_18, %c0_19], %20 {strides = array<i32>} : memref<4x8x64xf32, #tpu.memory_space<vmem>>, vector<4x8x64xf32>,
    %22 = arith.truncf %18 : vector<4x8x8xf32> to vector<4x8x8xbf16>
    %c0_20 = arith.constant 0 : index
    %c0_21 = arith.constant 0 : index
    %c0_22 = arith.constant 0 : index
    %23 = vector.load %arg7[%c0_20, %c0_21, %c0_22] : memref<4x8x8xbf16, #tpu.memory_space<vmem>>, vector<4x8x8xbf16>
    tpu.vector_store %arg7[%c0_20, %c0_21, %c0_22], %22 {strides = array<i32>} : memref<4x8x8xbf16, #tpu.memory_space<vmem>>, vector<4x8x8xbf16>,
    return
  }
  func.func @transform_0(%arg0: i32, %arg1: i32) -> (i32, i32, i32) {
    %c0_i32 = arith.constant 0 : i32
    %c0_i32_0 = arith.constant 0 : i32
    return %arg0, %arg1, %c0_i32 : i32, i32, i32
  }
  func.func @transform_1(%arg0: i32, %arg1: i32) -> (i32, i32, i32) {
    %c0_i32 = arith.constant 0 : i32
    %c0_i32_0 = arith.constant 0 : i32
    %c0_i32_1 = arith.constant 0 : i32
    return %arg0, %c0_i32, %c0_i32_0 : i32, i32, i32
  }
  func.func @transform_2(%arg0: i32, %arg1: i32) -> (i32, i32, i32) {
    %c0_i32 = arith.constant 0 : i32
    %c0_i32_0 = arith.constant 0 : i32
    %c0_i32_1 = arith.constant 0 : i32
    return %arg0, %c0_i32, %c0_i32_0 : i32, i32, i32
  }
  func.func @transform_3(%arg0: i32, %arg1: i32) -> (i32, i32, i32) {
    %c0_i32 = arith.constant 0 : i32
    %c0_i32_0 = arith.constant 0 : i32
    return %arg0, %arg1, %c0_i32 : i32, i32, i32
  }
  func.func @transform_4(%arg0: i32, %arg1: i32) -> (i32, i32, i32) {
    %c0_i32 = arith.constant 0 : i32
    %c0_i32_0 = arith.constant 0 : i32
    return %arg0, %arg1, %c0_i32 : i32, i32, i32
  }
  func.func @transform_5(%arg0: i32, %arg1: i32) -> (i32, i32, i32) {
    %c0_i32 = arith.constant 0 : i32
    %c0_i32_0 = arith.constant 0 : i32
    return %arg0, %arg1, %c0_i32 : i32, i32, i32
  }
}

</mosaic_0001>

<bundles_post_ra>
// kernel: tpu_custom_call.1
= control target key start
LH: loop header
LB: loop body
LE: loop exit
PB: predicated region body
PF: predicated region fallthrough
CT: control target
= control target key end

     0   :  { %11 = vsyncpa [#allocation3], 0  ;;  %s867_s0 = inlined_call_operand.vmem [shape: bf16[4,8,64], index: 0, kind: input, shape index: {}]   ;;  %s868_s1 = inlined_call_operand.vmem [shape: bf16[4,8,64], index: 1, kind: input, shape index: {}]   ;;  %s869_s2 = inlined_call_operand.hbm [shape: bf16[4,8,64], index: 2, kind: input, shape index: {}]   ;;  %s870_s3 = inlined_call_operand.vmem [shape: s32[4,8,8], index: 3, kind: input, shape index: {}]   ;;  %s871_s4 = inlined_call_operand.hbm [shape: f32[4,8,64], index: 4, kind: output, shape index: {0}]   ;;  %s872_s5 = inlined_call_operand.hbm [shape: bf16[4,8,8], index: 5, kind: output, shape index: {1}]  }
   0x1   :  { %12 = vsyncpa [#allocation4], 0 }
   0x2   :  { %13 = vsyncpa [#allocation7], 0  ;;  %s694_s18 = smov [#allocation2]   ;;  %s622_s22 = scalar_lea.hbm %s869_s2, 256 }
   0x3   :  { %s23_s19 = sshll.u32 %s694_s18, 4  ;;  %p623_p0 = scmp.ne.s32.totalorder %s869_s2, %s622_s22  ;;  %s24_s19 = int_to_ptr.vmem [resolvable:$true] %s23_s19 }
   0x4   :  { %p626_p1 = scmp.lt.u32.totalorder %s622_s22, %s869_s2 }
   0x6   :  { %p628_p2 = pnand %p626_p1, %p623_p0 }
   0x8   :  { %631 = shalt.err (!%p628_p2)
}
   0x9   :  { %s632_s27 = scalar_lea.vmem %s24_s19, 256  ;;  %p637_p4 = scmp.lt.s32.totalorder %s24_s19, %s24_s19 }
   0xa   :  { %p633_p3 = scmp.ne.s32.totalorder %s24_s19, %s632_s27  ;;  %p638_p5 = scmp.lt.s32.totalorder %s632_s27, %s632_s27 }
   0xc   :  { %p639_p6 = por %p638_p5, %p637_p4 }
   0xe   :  { %p640_p7 = pnand %p639_p6, %p633_p3 }
  0x10   :  { %643 = shalt.err (!%p640_p7)
}
  0x11   :  { %s695_s28 = smov 64   ;;  %s696_s29 = smov 4  }
  0x12   :  { %29 = dma.hbm_to_vmem [thread:$0]  %s869_s2, 256, %s24_s19, [#allocation3], %s695_s28, %s695_s28, %s696_s29  }
  0x13   :  { %688 = dma.done.wait [#allocation3], 256  }
  0x14   :  { %689 = vsyncadd [#allocation3], 4294967040  ;;  %v697_v0 = vmov 0.0   ;;  %vm698_vm0 = vmmov 0   ;;  %vm56_vm1 = vcmask 523264   ;;  %v48_v13 = vld [vmem:[%s870_s3] sm:$0xff] }
  0x15   :  { %549 = vmatprep.subr.bf16.mxu0 %v697_v0  ;;  %555 = vmatprep.subr.bf16.mxu1 %v697_v0  ;;  %v40_v1 = vld [vmem:[%s868_s1] sm:$0xf]  ;;  %v41_v2 = vld [vmem:[%s868_s1 + $0x4] sm:$0xf]  ;;  %v42_v5 = vld [vmem:[%s868_s1 + $0x8] sm:$0xf] }
  0x16   :  { %551 = vmatprep.mubr.msk.bf16.mxu0 %vm698_vm0, %v697_v0  ;;  %557 = vmatprep.mubr.msk.bf16.mxu1 %vm698_vm0, %v697_v0  ;;  %v61_v3 = vsel %vm56_vm1, %v40_v1, 0  ;;  %v107_v4 = vsel %vm56_vm1, %v41_v2, 0  ;;  %v43_v6 = vld [vmem:[%s868_s1 + $0xc] sm:$0xf]  ;;  %v36_v7 = vld [vmem:[%s867_s0] sm:$0xf] }
  0x17   :  { %550 = vmatpush3.bf16.xpose.msra.mxu0 %v61_v3  ;;  %556 = vmatpush3.bf16.xpose.msra.mxu1 %v107_v4  ;;  %v37_v8 = vld [vmem:[%s867_s0 + $0x4] sm:$0xf]  ;;  %v153_v9 = vsel %vm56_vm1, %v42_v5, 0  ;;  %v199_v10 = vsel %vm56_vm1, %v43_v6, 0  ;;  %v38_v11 = vld [vmem:[%s867_s0 + $0x8] sm:$0xf] }
  0x18   :  { %561 = vmatprep.subr.bf16.mxu0 %v697_v0  ;;  %567 = vmatprep.subr.bf16.mxu1 %v697_v0  ;;  %v39_v12 = vld [vmem:[%s867_s0 + $0xc] sm:$0xf]  ;;  %vm52_vm2 = vcmp.ne.s32.totalorder %v48_v13, 0  ;;  %vm245_vm4 = vcmask 64512   ;;  %v50_v26 = vld [vmem:[%s870_s3 + $0x10] sm:$0xff]  ;;  %v51_v27 = vld [vmem:[%s870_s3 + $0x18] sm:$0xff] }
  0x19   :  { %v49_v14 = vld [vmem:[%s870_s3 + $0x8] sm:$0xff]  ;;  %vm54_vm5 = vcmp.ne.s32.totalorder %v50_v26, 0  ;;  %vm55_vm6 = vcmp.ne.s32.totalorder %v51_v27, 0  ;;  %v44_v61 = vld [vmem:[#allocation2] sm:$0xf]  ;;  %vm301_vm7 = vcmask 1043456  }
  0x1a   :  { %vm53_vm3 = vcmp.ne.s32.totalorder %v49_v14, 0  ;;  %v303_v62 = vsel %vm301_vm7, %v44_v61, 0  ;;  %v45_v63 = vld [vmem:[#allocation2 + $0x4] sm:$0xf]  ;;  %v46_v6 = vld [vmem:[#allocation2 + $0x8] sm:$0xf] }
  0x1b   :  { %v349_v1 = vsel %vm301_vm7, %v45_v63, 0  ;;  %vm487_vm8 = vcmask 60416   ;;  %s699_s3 = smov [#allocation6]  }
  0x1c   :  { %s509_s30 = sshll.u32 %s699_s3, 4  ;;  %s510_s30 = int_to_ptr.vmem [resolvable:$true] %s509_s30 }
  0x1d   :  { %s644_s6 = scalar_lea.vmem %s510_s30, 256  ;;  %p649_p9 = scmp.lt.s32.totalorder %s510_s30, %s510_s30 }
  0x1e   :  { %552 = vmatmul.mubr.msk.bf16.vlgmr.msra.gmra.mrb[0].mxu0 %vm56_vm1, %v36_v7  ;;  %558 = vmatmul.mubr.msk.bf16.vlgmr.msra.gmra.mrb[0].mxu1 %vm56_vm1, %v37_v8  ;;  %p645_p8 = scmp.ne.s32.totalorder %s510_s30, %s644_s6  ;;  %p650_p10 = scmp.lt.s32.totalorder %s644_s6, %s644_s6 }
  0x1f   :  { %562 = vmatpush3.bf16.xpose.msra.mxu0 %v153_v9  ;;  %568 = vmatpush3.bf16.xpose.msra.mxu1 %v199_v10  ;;  %v395_v10 = vsel %vm301_vm7, %v46_v6, 0 }
  0x20   :  { %563 = vmatprep.mubr.msk.bf16.mxu0 %vm698_vm0, %v697_v0  ;;  %569 = vmatprep.mubr.msk.bf16.mxu1 %vm698_vm0, %v697_v0  ;;  %p651_p11 = por %p650_p10, %p649_p9 }
  0x21   :  { %573 = vmatprep.subr.bf16.mxu0 %v697_v0  ;;  %579 = vmatprep.subr.bf16.mxu1 %v697_v0 }
  0x22   :  { %p652_p12 = pnand %p651_p11, %p645_p8 }
  0x26   :  { %564 = vmatmul.mubr.msk.bf16.vlgmr.msra.gmra.mrb[4].mxu0 %vm56_vm1, %v38_v11  ;;  %570 = vmatmul.mubr.msk.bf16.vlgmr.msra.gmra.mrb[4].mxu1 %vm56_vm1, %v39_v12  ;;  %v47_v12 = vld [vmem:[#allocation2 + $0xc] sm:$0xf] }
  0x27   :  { %575 = vmatprep.mubr.msk.bf16.mxu0 %vm698_vm0, %v697_v0  ;;  %581 = vmatprep.mubr.msk.bf16.mxu1 %vm698_vm0, %v697_v0 }
  0x28   :  { %574 = vmatpush3.bf16.msra.mxu0 %v303_v62  ;;  %580 = vmatpush3.bf16.msra.mxu1 %v349_v1 }
  0x29   :  { %585 = vmatprep.subr.bf16.mxu0 %v697_v0  ;;  %591 = vmatprep.subr.bf16.mxu1 %v697_v0 }
  0xf1   :  { %v97_v15 = vpop.f32.mrb[0].mxu0  ;;  %v143_v16 = vpop.f32.mrb[0].mxu1 }
  0xf2   :  { %v241_v17 = vsel %vm52_vm2, -1e+09, %v97_v15  ;;  %v553_v18 = vpop.f32.mrb[1].mxu0  ;;  %v242_v19 = vsel %vm53_vm3, -1e+09, %v143_v16  ;;  %v559_v20 = vpop.f32.mrb[1].mxu1 }
  0xf3   :  { %v100_v21 = vpop.f32.mrb[2].mxu0  ;;  %v246_v22 = vsel %vm245_vm4, %v241_v17, -inf  ;;  %v146_v23 = vpop.f32.mrb[2].mxu1  ;;  %v249_v28 = vsel %vm245_vm4, %v242_v19, -inf  ;;  %v441_v15 = vsel %vm301_vm7, %v47_v12, 0 }
  0xf4   :  { %247 = vmax.xlane.f32.xlu0 %v246_v22  ;;  %v554_v24 = vpop.f32.mrb[3].mxu0  ;;  %v560_v25 = vpop.f32.mrb[3].mxu1 }
  0xf8   :  { %250 = vmax.xlane.f32.xlu0 %v249_v28 }
  0xf9   :  { %v189_v29 = vpop.f32.mrb[4].mxu0  ;;  %v235_v30 = vpop.f32.mrb[4].mxu1 }
  0xfa   :  { %v243_v31 = vsel %vm54_vm5, -1e+09, %v189_v29  ;;  %v565_v32 = vpop.f32.mrb[5].mxu0  ;;  %v244_v33 = vsel %vm55_vm6, -1e+09, %v235_v30  ;;  %v571_v34 = vpop.f32.mrb[5].mxu1 }
  0xfb   :  { %v192_v35 = vpop.f32.mrb[6].mxu0  ;;  %v252_v36 = vsel %vm245_vm4, %v243_v31, -inf  ;;  %v238_v37 = vpop.f32.mrb[6].mxu1  ;;  %v255_v40 = vsel %vm245_vm4, %v244_v33, -inf }
  0xfc   :  { %253 = vmax.xlane.f32.xlu1 %v252_v36  ;;  %v566_v38 = vpop.f32.mrb[7].mxu0  ;;  %v572_v39 = vpop.f32.mrb[7].mxu1 }
 0x100   :  { %256 = vmax.xlane.f32.xlu1 %v255_v40 }
 0x181   :  { %v248_v41 = vpop.xlane.xlu0 %247 }
 0x182   :  { %v258_v42 = vsub.f32 %v241_v17, %v248_v41 }
 0x184   :  { %v262_v43 = vmul.f32 1.442695, %v258_v42 }
 0x185   :  { %v251_v44 = vpop.xlane.xlu0 %250 }
 0x186   :  { %606 = vpow2.f32 %v262_v43  ;;  %v259_v45 = vsub.f32 %v242_v19, %v251_v44 }
 0x188   :  { %v264_v46 = vmul.f32 1.442695, %v259_v45 }
 0x189   :  { %v254_v47 = vpop.xlane.xlu1 %253 }
 0x18a   :  { %608 = vpow2.f32 %v264_v46  ;;  %v260_v48 = vsub.f32 %v243_v31, %v254_v47 }
 0x18c   :  { %v266_v49 = vmul.f32 1.442695, %v260_v48 }
 0x18d   :  { %v257_v50 = vpop.xlane.xlu1 %256 }
 0x18e   :  { %610 = vpow2.f32 %v266_v49  ;;  %v261_v51 = vsub.f32 %v244_v33, %v257_v50 }
 0x190   :  { %v607_v52 = vpop.eup %606  ;;  %v268_v53 = vmul.f32 1.442695, %v261_v51 }
 0x191   :  { %v270_v54 = vsel %vm245_vm4, %v607_v52, 0.0 }
 0x192   :  { %612 = vpow2.f32 %v268_v53  ;;  %271 = vadd.xlane.f32.xlu0 %v270_v54 }
 0x194   :  { %v609_v55 = vpop.eup %608 }
 0x195   :  { %v273_v56 = vsel %vm245_vm4, %v609_v55, 0.0 }
 0x196   :  { %274 = vadd.xlane.f32.xlu1 %v273_v56 }
 0x198   :  { %v611_v57 = vpop.eup %610 }
 0x199   :  { %v276_v58 = vsel %vm245_vm4, %v611_v57, 0.0 }
 0x19a   :  { %277 = vadd.xlane.f32.xlu0 %v276_v58 }
 0x19c   :  { %v613_v59 = vpop.eup %612 }
 0x19d   :  { %v279_v60 = vsel %vm245_vm4, %v613_v59, 0.0 }
 0x19e   :  { %280 = vadd.xlane.f32.xlu1 %v279_v60 }
 0x21f   :  { %v272_v2 = vpop.xlane.xlu0 %271 }
 0x220   :  { %614 = vrcp.f32 %v272_v2 }
 0x223   :  { %v275_v3 = vpop.xlane.xlu1 %274 }
 0x224   :  { %616 = vrcp.f32 %v275_v3 }
 0x227   :  { %v278_v4 = vpop.xlane.xlu0 %277 }
 0x228   :  { %618 = vrcp.f32 %v278_v4 }
 0x22a   :  { %v615_v5 = vpop.eup %614 }
 0x22b   :  { %v290_v7 = vmul.f32 %v615_v5, %v607_v52  ;;  %v281_v8 = vpop.xlane.xlu1 %280 }
 0x22c   :  { %620 = vrcp.f32 %v281_v8 }
 0x22d   :  { %v294_v9 = vpack.c.bf16 %v290_v7, %v290_v7 }
 0x22e   :  { %v617_v11 = vpop.eup %616 }
 0x22f   :  { %v291_v13 = vmul.f32 %v617_v11, %v609_v55  ;;  %576 = vmatmul.mubr.msk.bf16.vlgmr.msra.gmra.mrb[8].mxu0 %vm245_vm4, %v294_v9  ;;  %488 = vst.msk [vmem:[#allocation6] sm:$0xf] %vm487_vm8, %v294_v9 }
 0x230   :  { %586 = vmatpush3.bf16.msra.mxu0 %v395_v10  ;;  %587 = vmatprep.mubr.msk.bf16.mxu0 %vm698_vm0, %v697_v0 }
 0x231   :  { %v295_v14 = vpack.c.bf16 %v291_v13, %v291_v13 }
 0x232   :  { %v619_v16 = vpop.eup %618 }
 0x233   :  { %v292_v17 = vmul.f32 %v619_v16, %v611_v57  ;;  %582 = vmatmul.mubr.msk.bf16.vlgmr.msra.gmra.mrb[8].mxu1 %vm245_vm4, %v295_v14  ;;  %489 = vst.msk [vmem:[#allocation6 + $0x4] sm:$0xf] %vm487_vm8, %v295_v14 }
 0x234   :  { %592 = vmatpush3.bf16.msra.mxu1 %v441_v15  ;;  %593 = vmatprep.mubr.msk.bf16.mxu1 %vm698_vm0, %v697_v0 }
 0x235   :  { %v296_v18 = vpack.c.bf16 %v292_v17, %v292_v17 }
 0x236   :  { %v621_v19 = vpop.eup %620 }
 0x237   :  { %v293_v20 = vmul.f32 %v621_v19, %v613_v59  ;;  %588 = vmatmul.mubr.msk.bf16.vlgmr.msra.gmra.mrb[12].mxu0 %vm245_vm4, %v296_v18  ;;  %490 = vst.msk [vmem:[#allocation6 + $0x8] sm:$0xf] %vm487_vm8, %v296_v18 }
 0x239   :  { %v297_v21 = vpack.c.bf16 %v293_v20, %v293_v20 }
 0x23b   :  { %594 = vmatmul.mubr.msk.bf16.vlgmr.msra.gmra.mrb[12].mxu1 %vm245_vm4, %v297_v21  ;;  %491 = vst.msk [vmem:[#allocation6 + $0xc] sm:$0xf] %vm487_vm8, %v297_v21 }
 0x23c   :  { %655 = shalt.err (!%p652_p12)
}
 0x23d   :  { %s656_s2 = scalar_lea.hbm %s872_s5, 256 }
 0x23e   :  { %p657_p13 = scmp.ne.s32.totalorder %s872_s5, %s656_s2  ;;  %p660_p0 = scmp.lt.u32.totalorder %s656_s2, %s872_s5 }
 0x240   :  { %p662_p1 = pnand %p660_p0, %p657_p13 }
 0x242   :  { %665 = shalt.err (!%p662_p1)
}
 0x243   :  { %515 = dma.vmem_to_hbm [thread:$0]  %s510_s30, 256, %s872_s5, [#allocation7], %s695_s28, %s695_s28, %s696_s29  }
 0x244   :  { %s700_s15 = smov [#allocation5]  }
 0x245   :  { %s497_s16 = sshll.u32 %s700_s15, 4  ;;  %s498_s16 = int_to_ptr.vmem [resolvable:$true] %s497_s16 }
 0x246   :  { %s666_s5 = scalar_lea.vmem %s498_s16, 512  ;;  %p671_p3 = scmp.lt.s32.totalorder %s498_s16, %s498_s16 }
 0x247   :  { %p667_p2 = scmp.ne.s32.totalorder %s498_s16, %s666_s5  ;;  %p672_p4 = scmp.lt.s32.totalorder %s666_s5, %s666_s5 }
 0x249   :  { %p673_p5 = por %p672_p4, %p671_p3 }
 0x24b   :  { %p674_p6 = pnand %p673_p5, %p667_p2 }
 0x302   :  { %v339_v0 = vpop.f32.mrb[8].mxu0 }
 0x303   :  { %483 = vst.msk [vmem:[#allocation5] sm:$0xff] %vm56_vm1, %v339_v0  ;;  %v577_v22 = vpop.f32.mrb[9].mxu0 }
 0x304   :  { %v342_v23 = vpop.f32.mrb[10].mxu0 }
 0x305   :  { %v578_v24 = vpop.f32.mrb[11].mxu0 }
 0x306   :  { %v385_v25 = vpop.f32.mrb[8].mxu1 }
 0x307   :  { %484 = vst.msk [vmem:[#allocation5 + $0x8] sm:$0xff] %vm56_vm1, %v385_v25  ;;  %v583_v26 = vpop.f32.mrb[9].mxu1 }
 0x308   :  { %v388_v27 = vpop.f32.mrb[10].mxu1 }
 0x309   :  { %v584_v28 = vpop.f32.mrb[11].mxu1 }
 0x30a   :  { %v431_v29 = vpop.f32.mrb[12].mxu0 }
 0x30b   :  { %485 = vst.msk [vmem:[#allocation5 + $0x10] sm:$0xff] %vm56_vm1, %v431_v29  ;;  %v589_v30 = vpop.f32.mrb[13].mxu0 }
 0x30c   :  { %v434_v31 = vpop.f32.mrb[14].mxu0 }
 0x30d   :  { %v590_v32 = vpop.f32.mrb[15].mxu0 }
 0x30e   :  { %v477_v33 = vpop.f32.mrb[12].mxu1 }
 0x30f   :  { %486 = vst.msk [vmem:[#allocation5 + $0x18] sm:$0xff] %vm56_vm1, %v477_v33  ;;  %v595_v34 = vpop.f32.mrb[13].mxu1 }
 0x310   :  { %v480_v35 = vpop.f32.mrb[14].mxu1 }
 0x311   :  { %677 = shalt.err (!%p674_p6)
}
 0x312   :  { %s678_s17 = scalar_lea.hbm %s871_s4, 512 }
 0x313   :  { %p679_p7 = scmp.ne.s32.totalorder %s871_s4, %s678_s17  ;;  %p682_p8 = scmp.lt.u32.totalorder %s678_s17, %s871_s4 }
 0x315   :  { %p684_p9 = pnand %p682_p8, %p679_p7 }
 0x317   :  { %687 = shalt.err (!%p684_p9)
}
 0x318   :  { %s701_s21 = smov 128   ;;  %s702_s22 = smov 8   ;;  %v596_v36 = vpop.f32.mrb[15].mxu1 }
 0x319   :  { %503 = dma.vmem_to_hbm [thread:$0]  %s498_s16, 512, %s871_s4, [#allocation4], %s701_s21, %s701_s21, %s702_s22  }
 0x31a   :  { %690 = dma.done.wait [#allocation4], 512  }
 0x31b   :  { %691 = vsyncadd [#allocation4], 4294966784 }
 0x31c   :  { %692 = dma.done.wait [#allocation7], 256  }
 0x31d   :  { %693 = vsyncadd [#allocation7], 4294967040 }
 0x31e   :  { %522 = vsyncpa [#allocation3], 1 }
 0x31f   :  { %523 = vsyncpa [#allocation4], 1 }
 0x320   :  { %524 = vsyncpa [#allocation7], 1 }

</bundles_post_ra>
